<compile_context>
chip_gen: v6e
topology: v6e:2x2x1
jax: 0.10.0
libtpu: 0.0.40
codegen_flags: <defaults>
</compile_context>

<pallas_src>
import functools

import numpy as np
import jax
import jax.numpy as jnp
from jax import lax
from jax.experimental import pallas as pl
from jax.experimental.pallas import tpu as pltpu

NEG_SLOPE = 0.2     # LeakyReLU negative slope
BN_EPS = 1e-5       # BatchNorm1d eps
ESUM_EPS = 1e-6     # softmax denominator eps (as in the module)
NEG_BIG = -1e30     # "-inf" sentinel (masked edges / channels)


def _round_up(x, m):
    return ((x + m - 1) // m) * m


def _gat_global_atom_attn_kernel(
    # ---- inputs (all VMEM) ----
    x_node_ref, x_edge_ref,        # (Nn, 2*in) block-diag node feats, (E, in) edge feats
    w_node_ref, w_edge_ref,        # folded weights: (2*in, 3*HD) [ft|el|er], (in, 2*HD) [ft|el]
    cmean_ref,                     # (HD, D) head-mean matrix
    gamma_ref, beta_ref,           # (1, D) BatchNorm affine params (f32)
    src_col_ref, dst_col_ref,      # (E, 1) int32 source-node / destination-atom indices
    dst_row_ref,                   # (1, E) int32 destination-atom indices (transposed one-hot)
    # ---- output ----
    out_ref,                       # (Na, D) f32
    *, n_atom_real, n_bond_real, n_edge_real, approx_recip,
):
    f32 = jnp.float32
    cdt = w_node_ref.dtype                    # MXU operand dtype (bf16 or f32)
    Na, D = out_ref.shape
    Nn = x_node_ref.shape[0]
    E = x_edge_ref.shape[0]
    HD = cmean_ref.shape[0]
    dotf = functools.partial(jnp.dot, preferred_element_type=f32)

    # ---- projections (attention replication pre-folded into the weights on the host) ----
    node = dotf(x_node_ref[...], w_node_ref[...])      # (Nn, 3HD) = [ft | el | er]
    eo = dotf(x_edge_ref[...], w_edge_ref[...])        # (E, 2HD)  = [ft_e | el_e]

    # ---- one-hot gather / scatter operands, built in-kernel (VPU iota + compare) ----
    oh_src = (lax.broadcasted_iota(jnp.int32, (E, Nn), 1) == src_col_ref[...]).astype(cdt)
    oh_dst = (lax.broadcasted_iota(jnp.int32, (E, Na), 1) == dst_col_ref[...]).astype(cdt)
    oh_dstT = (lax.broadcasted_iota(jnp.int32, (Na, E), 0) == dst_row_ref[...]).astype(cdt)
    # (padded edges carry index -1 -> all-zero one-hot rows: they gather/scatter nothing)

    src_tbl = node[:, 0:2 * HD].astype(cdt)             # [ft | el] for every atom/global node
    er_tbl = node[0:Na, 2 * HD:3 * HD].astype(cdt)      # er, atoms only

    src_g = dotf(oh_src, src_tbl)                       # (E, 2HD) = [ft_src | el_src]
    er_d = dotf(oh_dst, er_tbl)                         # (E, HD)  = er[dst]

    # validity masks: channel 1 (u_add_v) valid for every real edge,
    # channel 2 (e_add_v) only for bond edges.
    row = lax.broadcasted_iota(jnp.int32, (E, 1), 0)
    inval1 = jnp.where(row < n_edge_real, 0.0, NEG_BIG)
    inval2 = jnp.where(row < n_bond_real, 0.0, NEG_BIG)

    def lrelu(x):
        return jnp.where(x > 0, x, NEG_SLOPE * x)

    s1 = lrelu(src_g[:, HD:2 * HD] + er_d) + inval1     # eh (bond rows) / eu (g2a rows)
    s2 = lrelu(eo[:, HD:2 * HD] + er_d) + inval2        # ee (bond rows), -inf elsewhere

    # per-lane global max shift: replaces the fully serialized per-destination segment
    # max; softmax is invariant to per-destination-constant shifts, only the underflow /
    # 1e-6 eps weighting changes.
    gmax = jnp.maximum(jnp.max(s1, axis=0, keepdims=True),
                       jnp.max(s2, axis=0, keepdims=True))   # (1, HD)
    p1 = jnp.exp(s1 - gmax)
    p2 = jnp.exp(s2 - gmax)

    # ---- per-destination sums via transposed one-hot matmuls (MXU) ----
    esum = dotf(oh_dstT, (p1 + p2).astype(cdt)) + ESUM_EPS   # (Na, HD)
    rcp = pl.reciprocal(esum, approx=approx_recip)           # one reciprocal, then multiplies
    rcp_d = dotf(oh_dst, rcp.astype(cdt))                    # (E, HD) gathered to edges

    # weighted messages; head-mean folded BEFORE the destination scatter (D-wide scatter)
    msg = src_g[:, 0:HD] * (p1 * rcp_d) + eo[:, 0:HD] * (p2 * rcp_d)   # (E, HD)
    msg_d = dotf(msg.astype(cdt), cmean_ref[...])                       # (E, D)
    agg = dotf(oh_dstT, msg_d.astype(cdt))                              # (Na, D)

    # ---- BatchNorm1d (training-mode biased stats over the real atoms) + ReLU ----
    amask = (lax.broadcasted_iota(jnp.int32, (Na, 1), 0) < n_atom_real).astype(f32)
    n = jnp.float32(n_atom_real)
    mean = jnp.sum(agg * amask, axis=0, keepdims=True) / n
    cent = (agg - mean) * amask
    var = jnp.sum(cent * cent, axis=0, keepdims=True) / n
    hn = cent * lax.rsqrt(var + BN_EPS) * gamma_ref[...] + beta_ref[...]
    out_ref[...] = jnp.maximum(hn, 0.0)
    # TODO(synk): BatchNorm running_mean/running_var buffer updates are stateful PyTorch
    # buffers and are not represented here (only the forward normalization is computed).


def gatconv_global_atom_attention(
    x_atom, x_bond, x_glob,
    W_atom, W_bond, W_glob, attn_l, attn_r, gamma, beta,
    bond_src, bond_dst, g2a_src, g2a_dst,
    use_bf16_mxu=True, approx_reciprocal=False,
):
    """Host wrapper: folds weights, pads/packs inputs and launches the fused kernel."""
    x_atom = np.asarray(x_atom, np.float32)
    x_bond = np.asarray(x_bond, np.float32)
    x_glob = np.asarray(x_glob, np.float32)
    W_atom = np.asarray(W_atom, np.float32)
    W_bond = np.asarray(W_bond, np.float32)
    W_glob = np.asarray(W_glob, np.float32)
    attn_l = np.asarray(attn_l, np.float32)
    attn_r = np.asarray(attn_r, np.float32)
    bond_src = np.asarray(bond_src, np.int32)
    bond_dst = np.asarray(bond_dst, np.int32)
    g2a_src = np.asarray(g2a_src, np.int32)
    g2a_dst = np.asarray(g2a_dst, np.int32)

    N_a, in_size = x_atom.shape
    E_b = x_bond.shape[0]
    N_g = x_glob.shape[0]
    E_g = g2a_src.shape[0]
    H, D = attn_l.shape
    HD = H * D
    cdt = jnp.bfloat16 if use_bf16_mxu else jnp.float32
    sub = 16 if use_bf16_mxu else 8              # native sublane tile of the MXU operand dtype

    Na_p = _round_up(N_a, sub)
    Ng_p = _round_up(N_g, sub)
    Nn_p = Na_p + Ng_p                           # combined node table: atoms then globals
    E = E_b + E_g                                # combined edge stream: bond then g2a
    E_p = _round_up(E, sub)

    # block-diagonal node features -> ONE projection matmul covers atoms and globals
    x_node = np.zeros((Nn_p, 2 * in_size), np.float32)
    x_node[:N_a, :in_size] = x_atom
    x_node[Na_p:Na_p + N_g, in_size:] = x_glob
    x_edge = np.zeros((E_p, in_size), np.float32)
    x_edge[:E_b] = x_bond

    # fold per-head attention vectors (lane-replicated, block-diagonal) into the weights
    A_l = np.zeros((HD, HD), np.float32)
    A_r = np.zeros((HD, HD), np.float32)
    for k in range(H):
        A_l[k * D:(k + 1) * D, k * D:(k + 1) * D] = np.tile(attn_l[k][:, None], (1, D))
        A_r[k * D:(k + 1) * D, k * D:(k + 1) * D] = np.tile(attn_r[k][:, None], (1, D))

    W_node = np.zeros((2 * in_size, 3 * HD), np.float32)
    W_node[:in_size, 0:HD] = W_atom
    W_node[:in_size, HD:2 * HD] = W_atom @ A_l
    W_node[:in_size, 2 * HD:] = W_atom @ A_r
    W_node[in_size:, 0:HD] = W_glob
    W_node[in_size:, HD:2 * HD] = W_glob @ A_l
    # globals are never edge destinations -> their `er` block stays zero

    W_edge = np.concatenate([W_bond, W_bond @ A_l], axis=1)       # (in, 2HD) [ft | el]
    C = np.tile(np.eye(D, dtype=np.float32) / H, (H, 1))          # (HD, D): mean over heads

    # combined edge indices; padded edges get -1 (all-zero one-hot rows)
    src = np.full((E_p,), -1, np.int32)
    dst = np.full((E_p,), -1, np.int32)
    src[:E_b] = bond_src
    src[E_b:E] = Na_p + g2a_src                  # globals live after the atoms in the node table
    dst[:E_b] = bond_dst
    dst[E_b:E] = g2a_dst

    gamma = np.asarray(gamma, np.float32).reshape(1, D)
    beta = np.asarray(beta, np.float32).reshape(1, D)

    args = (
        jnp.asarray(x_node, cdt), jnp.asarray(x_edge, cdt),
        jnp.asarray(W_node, cdt), jnp.asarray(W_edge, cdt), jnp.asarray(C, cdt),
        jnp.asarray(gamma), jnp.asarray(beta),
        jnp.asarray(src.reshape(E_p, 1)), jnp.asarray(dst.reshape(E_p, 1)),
        jnp.asarray(dst.reshape(1, E_p)),
    )

    vmem = pl.BlockSpec(memory_space=pltpu.MemorySpace.VMEM)

    # advisory cost estimate + explicit scoped-VMEM limit (16/32 MiB defaults are the
    # first thing that breaks on v5e / v7x)
    flops = 2 * (Nn_p * (2 * in_size) * (3 * HD) + E_p * in_size * (2 * HD)
                 + E_p * Nn_p * (2 * HD) + 2 * E_p * Na_p * HD
                 + Na_p * E_p * HD + E_p * HD * D + Na_p * E_p * D)
    transcendentals = 2 * E_p * HD + Na_p * HD
    bytes_accessed = int(sum(int(np.prod(a.shape)) * a.dtype.itemsize for a in args)
                         + Na_p * D * 4)
    item = 2 if use_bf16_mxu else 4
    vmem_est = int(bytes_accessed
                   + (E_p * Nn_p + 2 * E_p * Na_p) * item          # in-kernel one-hots
                   + 12 * E_p * HD * 4 + Nn_p * 3 * HD * 4)        # f32 intermediates
    vmem_limit = int(min(max(2 * vmem_est, 32 * 1024 * 1024), 100 * 1024 * 1024))

    kernel = functools.partial(
        _gat_global_atom_attn_kernel,
        n_atom_real=N_a, n_bond_real=E_b, n_edge_real=E,
        approx_recip=bool(approx_reciprocal),
    )

    out = pl.pallas_call(
        kernel,
        out_shape=jax.ShapeDtypeStruct((Na_p, D), jnp.float32),
        in_specs=[vmem] * len(args),
        out_specs=vmem,
        compiler_params=pltpu.CompilerParams(vmem_limit_bytes=vmem_limit),
        cost_estimate=pl.CostEstimate(flops=flops, transcendentals=transcendentals,
                                      bytes_accessed=bytes_accessed),
    )(*args)
    return out[:N_a]


def _reference(x_atom, x_bond, x_glob, W_a, W_b, W_g, attn_l, attn_r, gamma, beta,
               bond_src, bond_dst, g2a_src, g2a_dst):
    """Pure-JAX f32 reference mirroring the DGL message passing (for verification)."""
    N_a = x_atom.shape[0]
    H, D = attn_l.shape
    h = (x_atom @ W_a).reshape(-1, H, D)
    e = (x_bond @ W_b).reshape(-1, H, D)
    u = (x_glob @ W_g).reshape(-1, H, D)
    er = (h * attn_r[None]).sum(-1)
    el_h = (h * attn_l[None]).sum(-1)
    el_e = (e * attn_l[None]).sum(-1)
    el_u = (u * attn_l[None]).sum(-1)
    lrelu = lambda x: jnp.where(x > 0, x, NEG_SLOPE * x)
    eh = lrelu(el_h[bond_src] + er[bond_dst])
    ee = lrelu(el_e + er[bond_dst])
    eu = lrelu(el_u[g2a_src] + er[g2a_dst])
    emax = jnp.maximum(jax.ops.segment_max(jnp.maximum(eh, ee), bond_dst, N_a),
                       jax.ops.segment_max(eu, g2a_dst, N_a))
    eh = jnp.exp(eh - emax[bond_dst]); ee = jnp.exp(ee - emax[bond_dst])
    eu = jnp.exp(eu - emax[g2a_dst])
    esum = (jax.ops.segment_sum(eh + ee, bond_dst, N_a)
            + jax.ops.segment_sum(eu, g2a_dst, N_a) + ESUM_EPS)
    alpha_h = eh / esum[bond_dst]; alpha_e = ee / esum[bond_dst]; alpha_u = eu / esum[g2a_dst]
    m_b = h[bond_src] * alpha_h[..., None] + e * alpha_e[..., None]
    m_g = u[g2a_src] * alpha_u[..., None]
    out = jax.ops.segment_sum(m_b, bond_dst, N_a) + jax.ops.segment_sum(m_g, g2a_dst, N_a)
    hm = out.mean(axis=1)
    mean = hm.mean(0); var = ((hm - mean) ** 2).mean(0)
    hn = (hm - mean) / jnp.sqrt(var + BN_EPS) * gamma[0] + beta[0]
    return jnp.maximum(hn, 0.0)


if __name__ == "__main__":
    in_size = 16
    out_size = 16
    num_heads = 2

    # molecule 0: 4-atom ring, molecule 1: 3-atom ring (sizes deliberately NOT multiples
    # of the sublane tile so the padding path is exercised); bonds are both directions of
    # each ring edge; g2a connects each molecule's global node to all of its atoms.
    bond_src = np.array([0, 1, 1, 2, 2, 3, 3, 0, 4, 5, 5, 6, 6, 4], np.int32)
    bond_dst = np.array([1, 0, 2, 1, 3, 2, 0, 3, 5, 4, 6, 5, 4, 6], np.int32)
    g2a_src = np.array([0, 0, 0, 0, 1, 1, 1], np.int32)
    g2a_dst = np.array([0, 1, 2, 3, 4, 5, 6], np.int32)
    N_atom, N_global, E_bond = 7, 2, len(bond_src)

    key = jax.random.PRNGKey(0)
    ks = jax.random.split(key, 8)
    x_atom = jax.random.normal(ks[0], (N_atom, in_size), jnp.float32)
    x_bond = jax.random.normal(ks[1], (E_bond, in_size), jnp.float32)
    x_glob = jax.random.normal(ks[2], (N_global, in_size), jnp.float32)

    HD = out_size * num_heads
    W_atom = jax.random.normal(ks[3], (in_size, HD), jnp.float32) / np.sqrt(in_size)
    W_bond = jax.random.normal(ks[4], (in_size, HD), jnp.float32) / np.sqrt(in_size)
    W_glob = jax.random.normal(ks[5], (in_size, HD), jnp.float32) / np.sqrt(in_size)
    gain = np.sqrt(2.0)  # relu gain (xavier_normal_)
    xav_std = gain * np.sqrt(2.0 / (num_heads * out_size + out_size))
    attn_l = jax.random.normal(ks[6], (num_heads, out_size), jnp.float32) * xav_std
    attn_r = jax.random.normal(ks[7], (num_heads, out_size), jnp.float32) * xav_std
    gamma = jnp.ones((1, out_size), jnp.float32)
    beta = jnp.zeros((1, out_size), jnp.float32)

    ref = _reference(
        x_atom, x_bond, x_glob, W_atom, W_bond, W_glob, attn_l, attn_r, gamma, beta,
        jnp.asarray(bond_src), jnp.asarray(bond_dst),
        jnp.asarray(g2a_src), jnp.asarray(g2a_dst),
    )

    # f32 MXU operands + exact reciprocal: tight check.
    out_f32 = gatconv_global_atom_attention(
        x_atom, x_bond, x_glob,
        W_atom, W_bond, W_glob, attn_l, attn_r, gamma, beta,
        bond_src, bond_dst, g2a_src, g2a_dst,
        use_bf16_mxu=False, approx_reciprocal=False,
    )
    jax.block_until_ready(out_f32)
    np.testing.assert_allclose(np.asarray(out_f32), np.asarray(ref), rtol=2e-3, atol=2e-3)

    # bf16 MXU operands + approximate reciprocal (fast path): loose sanity check vs f32 ref.
    out_bf16 = gatconv_global_atom_attention(
        x_atom, x_bond, x_glob,
        W_atom, W_bond, W_glob, attn_l, attn_r, gamma, beta,
        bond_src, bond_dst, g2a_src, g2a_dst,
        use_bf16_mxu=True, approx_reciprocal=True,
    )
    jax.block_until_ready(out_bf16)
    np.testing.assert_allclose(np.asarray(out_bf16), np.asarray(ref), rtol=1e-1, atol=1e-1)

    print("KERNEL_OK")
</pallas_src>

<mosaic_0001>
module attributes {stable_mosaic.version = 11 : i64} {
  func.func @_gat_global_atom_attn_kernel(%arg0: memref<16x32xf32, #tpu.memory_space<vmem>>, %arg1: memref<24x16xf32, #tpu.memory_space<vmem>>, %arg2: memref<32x96xf32, #tpu.memory_space<vmem>>, %arg3: memref<16x64xf32, #tpu.memory_space<vmem>>, %arg4: memref<32x16xf32, #tpu.memory_space<vmem>>, %arg5: memref<1x16xf32, #tpu.memory_space<vmem>>, %arg6: memref<1x16xf32, #tpu.memory_space<vmem>>, %arg7: memref<24x1xi32, #tpu.memory_space<vmem>>, %arg8: memref<24x1xi32, #tpu.memory_space<vmem>>, %arg9: memref<1x24xi32, #tpu.memory_space<vmem>>, %arg10: memref<8x16xf32, #tpu.memory_space<vmem>>) attributes {dimension_semantics = [], scalar_prefetch = 0 : i64, scratch_operands = 0 : i64, tpu.core_type = #tpu.core_type<tc>} {
    %c0 = arith.constant 0 : index
    %c0_0 = arith.constant 0 : index
    %0 = vector.load %arg0[%c0, %c0_0] : memref<16x32xf32, #tpu.memory_space<vmem>>, vector<16x32xf32>
    %c0_1 = arith.constant 0 : index
    %c0_2 = arith.constant 0 : index
    %1 = vector.load %arg2[%c0_1, %c0_2] : memref<32x96xf32, #tpu.memory_space<vmem>>, vector<32x96xf32>
    %cst = arith.constant dense<0.000000e+00> : vector<16x96xf32>
    %2 = tpu.matmul %0, %1, %cst {dimension_numbers = #tpu.dot_dimension_numbers<[1], [0], [0], [1], [0, 0, 1, 1], [], []>} : vector<16x32xf32>, vector<32x96xf32>, vector<16x96xf32> -> vector<16x96xf32>
    %c0_3 = arith.constant 0 : index
    %c0_4 = arith.constant 0 : index
    %3 = vector.load %arg1[%c0_3, %c0_4] : memref<24x16xf32, #tpu.memory_space<vmem>>, vector<24x16xf32>
    %c0_5 = arith.constant 0 : index
    %c0_6 = arith.constant 0 : index
    %4 = vector.load %arg3[%c0_5, %c0_6] : memref<16x64xf32, #tpu.memory_space<vmem>>, vector<16x64xf32>
    %cst_7 = arith.constant dense<0.000000e+00> : vector<24x64xf32>
    %5 = tpu.matmul %3, %4, %cst_7 {dimension_numbers = #tpu.dot_dimension_numbers<[1], [0], [0], [1], [0, 0, 1, 1], [], []>} : vector<24x16xf32>, vector<16x64xf32>, vector<24x64xf32> -> vector<24x64xf32>
    %6 = tpu.iota {dimensions = array<i32: 1>} : vector<24x16xi32>
    %c0_8 = arith.constant 0 : index
    %c0_9 = arith.constant 0 : index
    %7 = vector.load %arg7[%c0_8, %c0_9] : memref<24x1xi32, #tpu.memory_space<vmem>>, vector<24x1xi32>
    %8 = vector.broadcast %7 : vector<24x1xi32> to vector<24x16xi32>
    %9 = arith.cmpi eq, %6, %8 : vector<24x16xi32>
    %10 = arith.extui %9 : vector<24x16xi1> to vector<24x16xi32>
    %11 = arith.sitofp %10 : vector<24x16xi32> to vector<24x16xf32>
    %12 = tpu.iota {dimensions = array<i32: 1>} : vector<24x8xi32>
    %c0_10 = arith.constant 0 : index
    %c0_11 = arith.constant 0 : index
    %13 = vector.load %arg8[%c0_10, %c0_11] : memref<24x1xi32, #tpu.memory_space<vmem>>, vector<24x1xi32>
    %14 = vector.broadcast %13 : vector<24x1xi32> to vector<24x8xi32>
    %15 = arith.cmpi eq, %12, %14 : vector<24x8xi32>
    %16 = arith.extui %15 : vector<24x8xi1> to vector<24x8xi32>
    %17 = arith.sitofp %16 : vector<24x8xi32> to vector<24x8xf32>
    %18 = tpu.iota {dimensions = array<i32: 0>} : vector<8x24xi32>
    %c0_12 = arith.constant 0 : index
    %c0_13 = arith.constant 0 : index
    %19 = vector.load %arg9[%c0_12, %c0_13] : memref<1x24xi32, #tpu.memory_space<vmem>>, vector<1x24xi32>
    %20 = vector.broadcast %19 : vector<1x24xi32> to vector<8x24xi32>
    %21 = arith.cmpi eq, %18, %20 : vector<8x24xi32>
    %22 = arith.extui %21 : vector<8x24xi1> to vector<8x24xi32>
    %23 = arith.sitofp %22 : vector<8x24xi32> to vector<8x24xf32>
    %24 = vector.extract_strided_slice %2 {offsets = [0, 0], sizes = [16, 64], strides = [1, 1]} : vector<16x96xf32> to vector<16x64xf32>
    %25 = vector.extract_strided_slice %2 {offsets = [0, 64], sizes = [8, 32], strides = [1, 1]} : vector<16x96xf32> to vector<8x32xf32>
    %cst_14 = arith.constant dense<0.000000e+00> : vector<24x64xf32>
    %26 = tpu.matmul %11, %24, %cst_14 {dimension_numbers = #tpu.dot_dimension_numbers<[1], [0], [0], [1], [0, 0, 1, 1], [], []>} : vector<24x16xf32>, vector<16x64xf32>, vector<24x64xf32> -> vector<24x64xf32>
    %cst_15 = arith.constant dense<0.000000e+00> : vector<24x32xf32>
    %27 = tpu.matmul %17, %25, %cst_15 {dimension_numbers = #tpu.dot_dimension_numbers<[1], [0], [0], [1], [0, 0, 1, 1], [], []>} : vector<24x8xf32>, vector<8x32xf32>, vector<24x32xf32> -> vector<24x32xf32>
    %28 = tpu.iota {dimensions = array<i32: 0>} : vector<24x1xi32>
    %c21_i32 = arith.constant 21 : i32
    %29 = vector.broadcast %c21_i32 : i32 to vector<24x1xi32>
    %30 = arith.cmpi slt, %28, %29 : vector<24x1xi32>
    %cst_16 = arith.constant 0.000000e+00 : f32
    %cst_17 = arith.constant -1.000000e+30 : f32
    %31 = vector.broadcast %cst_16 : f32 to vector<24x1xf32>
    %32 = vector.broadcast %cst_17 : f32 to vector<24x1xf32>
    %33 = arith.select %30, %31, %32 : vector<24x1xi1>, vector<24x1xf32>
    %c14_i32 = arith.constant 14 : i32
    %34 = vector.broadcast %c14_i32 : i32 to vector<24x1xi32>
    %35 = arith.cmpi slt, %28, %34 : vector<24x1xi32>
    %cst_18 = arith.constant 0.000000e+00 : f32
    %cst_19 = arith.constant -1.000000e+30 : f32
    %36 = vector.broadcast %cst_18 : f32 to vector<24x1xf32>
    %37 = vector.broadcast %cst_19 : f32 to vector<24x1xf32>
    %38 = arith.select %35, %36, %37 : vector<24x1xi1>, vector<24x1xf32>
    %39 = vector.extract_strided_slice %26 {offsets = [0, 32], sizes = [24, 32], strides = [1, 1]} : vector<24x64xf32> to vector<24x32xf32>
    %40 = arith.addf %39, %27 : vector<24x32xf32>
    %cst_20 = arith.constant 0.000000e+00 : f32
    %41 = vector.broadcast %cst_20 : f32 to vector<24x32xf32>
    %42 = arith.cmpf ogt, %40, %41 : vector<24x32xf32>
    %cst_21 = arith.constant 2.000000e-01 : f32
    %43 = vector.broadcast %cst_21 : f32 to vector<24x32xf32>
    %44 = arith.mulf %43, %40 : vector<24x32xf32>
    %45 = arith.select %42, %40, %44 : vector<24x32xi1>, vector<24x32xf32>
    %46 = vector.broadcast %33 : vector<24x1xf32> to vector<24x32xf32>
    %47 = arith.addf %45, %46 : vector<24x32xf32>
    %48 = vector.extract_strided_slice %5 {offsets = [0, 32], sizes = [24, 32], strides = [1, 1]} : vector<24x64xf32> to vector<24x32xf32>
    %49 = arith.addf %48, %27 : vector<24x32xf32>
    %cst_22 = arith.constant 0.000000e+00 : f32
    %50 = vector.broadcast %cst_22 : f32 to vector<24x32xf32>
    %51 = arith.cmpf ogt, %49, %50 : vector<24x32xf32>
    %cst_23 = arith.constant 2.000000e-01 : f32
    %52 = vector.broadcast %cst_23 : f32 to vector<24x32xf32>
    %53 = arith.mulf %52, %49 : vector<24x32xf32>
    %54 = arith.select %51, %49, %53 : vector<24x32xi1>, vector<24x32xf32>
    %55 = vector.broadcast %38 : vector<24x1xf32> to vector<24x32xf32>
    %56 = arith.addf %54, %55 : vector<24x32xf32>
    %cst_24 = arith.constant dense<0xFF800000> : vector<32xf32>
    %57 = vector.multi_reduction <maximumf>, %47, %cst_24 [0] : vector<24x32xf32> to vector<32xf32>
    %58 = vector.shape_cast %57 : vector<32xf32> to vector<1x32xf32>
    %cst_25 = arith.constant dense<0xFF800000> : vector<32xf32>
    %59 = vector.multi_reduction <maximumf>, %56, %cst_25 [0] : vector<24x32xf32> to vector<32xf32>
    %60 = vector.shape_cast %59 : vector<32xf32> to vector<1x32xf32>
    %61 = arith.maximumf %58, %60 : vector<1x32xf32>
    %62 = vector.broadcast %61 : vector<1x32xf32> to vector<24x32xf32>
    %63 = arith.subf %47, %62 : vector<24x32xf32>
    %64 = math.exp %63 : vector<24x32xf32>
    %65 = vector.broadcast %61 : vector<1x32xf32> to vector<24x32xf32>
    %66 = arith.subf %56, %65 : vector<24x32xf32>
    %67 = math.exp %66 : vector<24x32xf32>
    %68 = arith.addf %64, %67 : vector<24x32xf32>
    %cst_26 = arith.constant dense<0.000000e+00> : vector<8x32xf32>
    %69 = tpu.matmul %23, %68, %cst_26 {dimension_numbers = #tpu.dot_dimension_numbers<[1], [0], [0], [1], [0, 0, 1, 1], [], []>} : vector<8x24xf32>, vector<24x32xf32>, vector<8x32xf32> -> vector<8x32xf32>
    %cst_27 = arith.constant 9.99999997E-7 : f32
    %70 = vector.broadcast %cst_27 : f32 to vector<8x32xf32>
    %71 = arith.addf %69, %70 : vector<8x32xf32>
    %72 = tpu.reciprocal %71 : vector<8x32xf32> -> vector<8x32xf32>
    %cst_28 = arith.constant dense<0.000000e+00> : vector<24x32xf32>
    %73 = tpu.matmul %17, %72, %cst_28 {dimension_numbers = #tpu.dot_dimension_numbers<[1], [0], [0], [1], [0, 0, 1, 1], [], []>} : vector<24x8xf32>, vector<8x32xf32>, vector<24x32xf32> -> vector<24x32xf32>
    %74 = vector.extract_strided_slice %26 {offsets = [0, 0], sizes = [24, 32], strides = [1, 1]} : vector<24x64xf32> to vector<24x32xf32>
    %75 = arith.mulf %64, %73 : vector<24x32xf32>
    %76 = arith.mulf %74, %75 : vector<24x32xf32>
    %77 = vector.extract_strided_slice %5 {offsets = [0, 0], sizes = [24, 32], strides = [1, 1]} : vector<24x64xf32> to vector<24x32xf32>
    %78 = arith.mulf %67, %73 : vector<24x32xf32>
    %79 = arith.mulf %77, %78 : vector<24x32xf32>
    %80 = arith.addf %76, %79 : vector<24x32xf32>
    %c0_29 = arith.constant 0 : index
    %c0_30 = arith.constant 0 : index
    %81 = vector.load %arg4[%c0_29, %c0_30] : memref<32x16xf32, #tpu.memory_space<vmem>>, vector<32x16xf32>
    %cst_31 = arith.constant dense<0.000000e+00> : vector<24x16xf32>
    %82 = tpu.matmul %80, %81, %cst_31 {dimension_numbers = #tpu.dot_dimension_numbers<[1], [0], [0], [1], [0, 0, 1, 1], [], []>} : vector<24x32xf32>, vector<32x16xf32>, vector<24x16xf32> -> vector<24x16xf32>
    %cst_32 = arith.constant dense<0.000000e+00> : vector<8x16xf32>
    %83 = tpu.matmul %23, %82, %cst_32 {dimension_numbers = #tpu.dot_dimension_numbers<[1], [0], [0], [1], [0, 0, 1, 1], [], []>} : vector<8x24xf32>, vector<24x16xf32>, vector<8x16xf32> -> vector<8x16xf32>
    %84 = tpu.iota {dimensions = array<i32: 0>} : vector<8x1xi32>
    %c7_i32 = arith.constant 7 : i32
    %85 = vector.broadcast %c7_i32 : i32 to vector<8x1xi32>
    %86 = arith.cmpi slt, %84, %85 : vector<8x1xi32>
    %87 = arith.extui %86 : vector<8x1xi1> to vector<8x1xi32>
    %88 = arith.sitofp %87 : vector<8x1xi32> to vector<8x1xf32>
    %89 = vector.broadcast %88 : vector<8x1xf32> to vector<8x16xf32>
    %90 = arith.mulf %83, %89 : vector<8x16xf32>
    %cst_33 = arith.constant dense<0.000000e+00> : vector<16xf32>
    %91 = vector.multi_reduction <add>, %90, %cst_33 [0] : vector<8x16xf32> to vector<16xf32>
    %92 = vector.shape_cast %91 : vector<16xf32> to vector<1x16xf32>
    %cst_34 = arith.constant 7.000000e+00 : f32
    %93 = vector.broadcast %cst_34 : f32 to vector<1x16xf32>
    %94 = arith.divf %92, %93 : vector<1x16xf32>
    %95 = vector.broadcast %94 : vector<1x16xf32> to vector<8x16xf32>
    %96 = arith.subf %83, %95 : vector<8x16xf32>
    %97 = vector.broadcast %88 : vector<8x1xf32> to vector<8x16xf32>
    %98 = arith.mulf %96, %97 : vector<8x16xf32>
    %99 = arith.mulf %98, %98 : vector<8x16xf32>
    %cst_35 = arith.constant dense<0.000000e+00> : vector<16xf32>
    %100 = vector.multi_reduction <add>, %99, %cst_35 [0] : vector<8x16xf32> to vector<16xf32>
    %101 = vector.shape_cast %100 : vector<16xf32> to vector<1x16xf32>
    %cst_36 = arith.constant 7.000000e+00 : f32
    %102 = vector.broadcast %cst_36 : f32 to vector<1x16xf32>
    %103 = arith.divf %101, %102 : vector<1x16xf32>
    %cst_37 = arith.constant 9.99999974E-6 : f32
    %104 = vector.broadcast %cst_37 : f32 to vector<1x16xf32>
    %105 = arith.addf %103, %104 : vector<1x16xf32>
    %106 = math.rsqrt %105 : vector<1x16xf32>
    %107 = vector.broadcast %106 : vector<1x16xf32> to vector<8x16xf32>
    %108 = arith.mulf %98, %107 : vector<8x16xf32>
    %c0_38 = arith.constant 0 : index
    %c0_39 = arith.constant 0 : index
    %109 = vector.load %arg5[%c0_38, %c0_39] : memref<1x16xf32, #tpu.memory_space<vmem>>, vector<1x16xf32>
    %110 = vector.broadcast %109 : vector<1x16xf32> to vector<8x16xf32>
    %111 = arith.mulf %108, %110 : vector<8x16xf32>
    %c0_40 = arith.constant 0 : index
    %c0_41 = arith.constant 0 : index
    %112 = vector.load %arg6[%c0_40, %c0_41] : memref<1x16xf32, #tpu.memory_space<vmem>>, vector<1x16xf32>
    %113 = vector.broadcast %112 : vector<1x16xf32> to vector<8x16xf32>
    %114 = arith.addf %111, %113 : vector<8x16xf32>
    %cst_42 = arith.constant 0.000000e+00 : f32
    %115 = vector.broadcast %cst_42 : f32 to vector<8x16xf32>
    %116 = arith.maximumf %114, %115 : vector<8x16xf32>
    %c0_43 = arith.constant 0 : index
    %c0_44 = arith.constant 0 : index
    %117 = vector.load %arg10[%c0_43, %c0_44] : memref<8x16xf32, #tpu.memory_space<vmem>>, vector<8x16xf32>
    tpu.vector_store %arg10[%c0_43, %c0_44], %116 {strides = array<i32>} : memref<8x16xf32, #tpu.memory_space<vmem>>, vector<8x16xf32>,
    return
  }
}

</mosaic_0001>

<bundles_post_ra>
// kernel: tpu_custom_call.1
= control target key start
LH: loop header
LB: loop body
LE: loop exit
PB: predicated region body
PF: predicated region fallthrough
CT: control target
= control target key end

     0   :  { %vm42_vm0 = vcmask 261120   ;;  %v1208_v3 = vmov 0   ;;  %s1511_s0 = inlined_call_operand.vmem [shape: f32[16,32], index: 0, kind: input, shape index: {}]   ;;  %s1512_s1 = inlined_call_operand.vmem [shape: f32[24,16], index: 1, kind: input, shape index: {}]   ;;  %s1513_s2 = inlined_call_operand.vmem [shape: f32[32,96], index: 2, kind: input, shape index: {}]   ;;  %s1514_s3 = inlined_call_operand.vmem [shape: f32[16,64], index: 3, kind: input, shape index: {}]   ;;  %s1515_s4 = inlined_call_operand.vmem [shape: f32[32,16], index: 4, kind: input, shape index: {}]   ;;  %s1516_s5 = inlined_call_operand.vmem [shape: f32[1,16], index: 5, kind: input, shape index: {}]   ;;  %s1517_s6 = inlined_call_operand.vmem [shape: f32[1,16], index: 6, kind: input, shape index: {}]   ;;  %s1518_s7 = inlined_call_operand.vmem [shape: s32[24,1], index: 7, kind: input, shape index: {}]   ;;  %s1519_s8 = inlined_call_operand.vmem [shape: s32[24,1], index: 8, kind: input, shape index: {}]   ;;  %s1520_s9 = inlined_call_operand.vmem [shape: s32[1,24], index: 9, kind: input, shape index: {}]   ;;  %s1521_s10 = inlined_call_operand.hbm [shape: f32[8,16], index: 10, kind: output, shape index: {}]  }
   0x1   :  { %v41_v0 = vld [vmem:[%s1513_s2 + $0x18] sm:$0xff]  ;;  %v40_v1 = vld [vmem:[%s1513_s2 + $0x10] sm:$0xff]  ;;  %v36_v2 = vld [vmem:[%s1511_s0] sm:$0xff]  ;;  %1168 = vset.pattern.permute.xlu0 %v1208_v3 }
   0x2   :  { %1066 = vmatprep.subr.mxu0 %v41_v0  ;;  %v39_v4 = vld [vmem:[%s1513_s2 + $0x8] sm:$0xff]  ;;  %1074 = vmatprep.mubr.msk.f32.mxu0 %vm42_vm0, %v36_v2  ;;  %v242_v5 = vld [vmem:[%s1519_s8] sm:$0xff] }
   0x3   :  { %1067 = vmatpush3.msra.mxu0 %v41_v0  ;;  %246 = vperm.xlu0 %1168, %v242_v5  }
   0x4   :  { %1068 = vmatprep.subr.mxu0 %v40_v1 }
   0x5   :  { %15 = vsyncpa [#allocation3], 0  ;;  %1069 = vmatpush3.msra.mxu0 %v40_v1  ;;  %v38_v6 = vld [vmem:[%s1513_s2] sm:$0xff]  ;;  %v243_v7 = vld [vmem:[%s1519_s8 + $0x8] sm:$0xff]  ;;  %1169 = vset.pattern.permute.xlu1 %v1208_v3  ;;  %v1209_v11 = vmov 0.0   ;;  %vm1210_vm1 = vmmov 0   ;;  %v219_v19 = vlaneseq }
   0x6   :  { %1070 = vmatprep.subr.mxu0 %v39_v4  ;;  %v37_v8 = vld [vmem:[%s1511_s0 + $0x8] sm:$0xff]  ;;  %v221_v9 = vld [vmem:[%s1518_s7] sm:$0xff]  ;;  %v223_v10 = vld [vmem:[%s1518_s7 + $0x10] sm:$0xff]  ;;  %1077 = vmatprep.subr.mxu1 %v1209_v11  ;;  %vm129_vm2 = vcmask 130048   ;;  %vm366_vm5 = vcmask 64512   ;;  %s1215_s14 = smov [#allocation2]  }
   0x7   :  { %1071 = vmatpush3.msra.mxu0 %v39_v4  ;;  %249 = vperm.xlu0 %1168, %v243_v7   ;;  %v128_v12 = vld [vmem:[%s1514_s3 + $0x8] sm:$0xff]  ;;  %v127_v13 = vld [vmem:[%s1514_s3] sm:$0xff]  ;;  %v126_v16 = vld [vmem:[%s1512_s1 + $0x10] sm:$0xff]  ;;  %v220_v20 = vand.u32 127, %v219_v19  ;;  %v1394_v54 = vshrl.u32 %v219_v19, 7  ;;  %s989_s15 = sshll.u32 %s1215_s14, 4  ;;  %s990_s15 = int_to_ptr.vmem [resolvable:$true] %s989_s15 }
   0x8   :  { %1072 = vmatprep.subr.mxu0 %v38_v6  ;;  %1078 = vmatpush3.msra.mxu1 %v128_v12  ;;  %v124_v14 = vld [vmem:[%s1512_s1] sm:$0xff]  ;;  %v125_v15 = vld [vmem:[%s1512_s1 + $0x8] sm:$0xff]  ;;  %s1211_s1 = smov 64   ;;  %v244_v25 = vld [vmem:[%s1519_s8 + $0x10] sm:$0xff]  ;;  %v1213_v0 = vmov -1e+30   ;;  %p1191_p1 = scmp.lt.s32.totalorder %s990_s15, %s990_s15 }
   0x9   :  { %1073 = vmatpush3.msra.mxu0 %v38_v6  ;;  %1081 = vmatprep.mubr.msk.f32.mxu1 %vm1210_vm1, %v1209_v11  ;;  %v222_v26 = vld [vmem:[%s1518_s7 + $0x8] sm:$0xff]  ;;  %s1212_s7 = smov 32   ;;  %v456_v55 = vadd.s32 8, %v1394_v54  ;;  %v457_v63 = vadd.s32 16, %v1394_v54  ;;  %s1214_s8 = smov 96  }
   0xa   :  { %1075 = vmatmul.mubr.msk.f32.vlgmr.msra.gmra.mxu0 %vm42_vm0, %v37_v8  ;;  %1090 = vmatprep.subr.mxu0 %v1209_v11  ;;  %s1186_s16 = scalar_lea.vmem %s990_s15, 128 }
   0xb   :  { %225 = vperm.xlu0 %1168, %v221_v9   ;;  %1079 = vmatprep.subr.mxu1 %v1209_v11  ;;  %vm465_vm10 = vcmp.lt.s32.totalorder %v456_v55, 14  ;;  %vm460_vm15 = vcmp.lt.s32.totalorder %v457_v63, 21  ;;  %p1187_p0 = scmp.ne.s32.totalorder %s990_s15, %s1186_s16  ;;  %p1192_p2 = scmp.lt.s32.totalorder %s1186_s16, %s1186_s16 }
   0xc   :  { %1094 = vmatprep.mubr.msk.f32.mxu0 %vm1210_vm1, %v1209_v11  ;;  %1080 = vmatpush3.msra.mxu1 %v127_v13  ;;  %v468_v1 = vsel %vm465_vm10, 0.0, %v1213_v0 }
   0xd   :  { %1082 = vmatmul.mubr.msk.f32.vlgmr.msra.gmra.mxu1 %vm129_vm2, %v124_v14  ;;  %1103 = vmatprep.subr.mxu1 %v1209_v11  ;;  %v463_v14 = vsel %vm460_vm15, 0.0, %v1213_v0  ;;  %p1193_p3 = por %p1192_p2, %p1191_p1 }
   0xe   :  { %1084 = vmatprep.mubr.msk.f32.mxu1 %vm1210_vm1, %v1209_v11 }
   0xf   :  { %231 = vperm.xlu0 %1168, %v223_v10   ;;  %p1194_p4 = pnand %p1193_p3, %p1187_p0 }
  0x11   :  { %1085 = vmatmul.mubr.msk.f32.gmra.mxu1 %vm129_vm2, %v125_v15 }
  0x12   :  { %1087 = vmatprep.mubr.msk.f32.mxu1 %vm1210_vm1, %v1209_v11 }
  0x15   :  { %1088 = vmatmul.mubr.msk.f32.gmra.mxu1 %vm129_vm2, %v126_v16 }
  0x16   :  { %1105 = vmatprep.mubr.msk.f32.mxu1 %vm1210_vm1, %v1209_v11 }
  0x7e   :  { %v247_v17 = vpop.permute.xlu0 %246 }
  0x7f   :  { %vm254_vm4 = vcmp.eq.s32.totalorder %v220_v20, %v247_v17 }
  0x80   :  { %v1355_v33 = vsel %vm254_vm4, 1.0, %v1209_v11 }
  0x82   :  { %v250_v18 = vpop.permute.xlu0 %249 }
  0x83   :  { %vm255_vm6 = vcmp.eq.s32.totalorder %v220_v20, %v250_v18 }
  0x84   :  { %v1361_v35 = vsel %vm255_vm6, 1.0, %v1209_v11 }
  0x86   :  { %v226_v21 = vpop.permute.xlu0 %225 }
  0x87   :  { %vm233_vm3 = vcmp.eq.s32.totalorder %v220_v20, %v226_v21 }
  0x88   :  { %v1002_v23 = vsel %vm233_vm3, 1.0, %v1209_v11  ;;  %vm512_vm3 = vcmask 523520  }
  0x8a   :  { %v232_v38 = vpop.permute.xlu0 %231 }
  0x8b   :  { %vm235_vm9 = vcmp.eq.s32.totalorder %v220_v20, %v232_v38 }
  0x8c   :  { %v1004_v41 = vsel %vm235_vm9, 1.0, %v1209_v11 }
  0xca   :  { %v1076_v22 = vpop.f32.mrf.mxu0 }
  0xcb   :  { %1091 = vmatpush3.msra.mxu0 %v1076_v22 }
  0xcc   :  { %v115_v24 = vpop.f32.mrf.mxu0  ;;  %1092 = vmatprep.subr.mxu0 %v1209_v11 }
  0xcd   :  { %363 = vrot.lane.b32.xlu1 %v115_v24, %s1211_s1  ;;  %1093 = vmatpush3.msra.mxu0 %v115_v24  ;;  %v1348_v27 = vpop.f32.mrf.mxu1 }
  0xce   :  { %1095 = vmatmul.mubr.msk.f32.vlgmr.msra.gmra.mxu0 %vm129_vm2, %v1002_v23  ;;  %1114 = vmatprep.subr.mxu0 %v1209_v11 }
  0xcf   :  { %1097 = vmatprep.mubr.msk.f32.mxu0 %vm1210_vm1, %v1209_v11  ;;  %v1083_v28 = vpop.f32.mrf.mxu1 }
  0xd1   :  { %252 = vperm.xlu1 %1169, %v244_v25   ;;  %v1350_v29 = vpop.f32.mrf.mxu1 }
  0xd3   :  { %v1086_v30 = vpop.f32.mrf.mxu1 }
  0xd5   :  { %228 = vperm.xlu1 %1169, %v222_v26   ;;  %v1352_v31 = vpop.f32.mrf.mxu1 }
  0xd7   :  { %v1089_v32 = vpop.f32.mrf.mxu1 }
 0x13f   :  { %v364_v34 = vpop.permute.xlu1 %363 }
 0x140   :  { %1104 = vmatpush3.msra.mxu1 %v364_v34 }
 0x141   :  { %1106 = vmatmul.mubr.msk.f32.vlgmr.msra.gmra.mxu1 %vm366_vm5, %v1355_v33  ;;  %1134 = vmatprep.subr.mxu1 %v1209_v11 }
 0x142   :  { %1108 = vmatprep.mubr.msk.f32.mxu1 %vm1210_vm1, %v1209_v11 }
 0x145   :  { %1109 = vmatmul.mubr.msk.f32.gmra.mxu1 %vm366_vm5, %v1361_v35 }
 0x146   :  { %1111 = vmatprep.mubr.msk.f32.mxu1 %vm1210_vm1, %v1209_v11 }
 0x14c   :  { %v253_v36 = vpop.permute.xlu1 %252 }
 0x14d   :  { %vm256_vm7 = vcmp.eq.s32.totalorder %v220_v20, %v253_v36 }
 0x14e   :  { %v1370_v37 = vsel %vm256_vm7, 1.0, %v1209_v11 }
 0x14f   :  { %1112 = vmatmul.mubr.msk.f32.gmra.mxu1 %vm366_vm5, %v1370_v37 }
 0x150   :  { %v229_v39 = vpop.permute.xlu1 %228  ;;  %1142 = vmatprep.mubr.msk.f32.mxu1 %vm1210_vm1, %v1209_v11 }
 0x151   :  { %vm234_vm8 = vcmp.eq.s32.totalorder %v220_v20, %v229_v39 }
 0x152   :  { %v1003_v40 = vsel %vm234_vm8, 1.0, %v1209_v11  ;;  %vm569_vm8 = vcmask 195584  }
 0x153   :  { %1098 = vmatmul.mubr.msk.f32.gmra.mxu0 %vm129_vm2, %v1003_v40 }
 0x154   :  { %1100 = vmatprep.mubr.msk.f32.mxu0 %vm1210_vm1, %v1209_v11 }
 0x157   :  { %1101 = vmatmul.mubr.msk.f32.gmra.mxu0 %vm129_vm2, %v1004_v41 }
 0x158   :  { %1120 = vmatprep.mubr.msk.f32.mxu0 %vm1210_vm1, %v1209_v11 }
 0x18e   :  { %v1384_v42 = vpop.f32.mrf.mxu0 }
 0x190   :  { %v1096_v43 = vpop.f32.mrf.mxu0 }
 0x201   :  { %v442_v44 = vpop.f32.mrf.mxu1 }
 0x202   :  { %473 = vrot.lane.b32.xlu0 %v442_v44, %s1212_s7 }
 0x203   :  { %v1107_v45 = vpop.f32.mrf.mxu1 }
 0x205   :  { %v447_v46 = vpop.f32.mrf.mxu1 }
 0x206   :  { %475 = vrot.lane.b32.xlu1 %v447_v46, %s1212_s7 }
 0x207   :  { %v1110_v47 = vpop.f32.mrf.mxu1 }
 0x20f   :  { %v452_v48 = vpop.f32.mrf.mxu1 }
 0x210   :  { %477 = vrot.lane.b32.xlu1 %v452_v48, %s1212_s7 }
 0x211   :  { %v1113_v49 = vpop.f32.mrf.mxu1 }
 0x213   :  { %v1389_v50 = vpop.f32.mrf.mxu0 }
 0x215   :  { %v1099_v51 = vpop.f32.mrf.mxu0 }
 0x217   :  { %v1391_v52 = vpop.f32.mrf.mxu0 }
 0x219   :  { %v1102_v53 = vpop.f32.mrf.mxu0 }
 0x274   :  { %v474_v57 = vpop.permute.xlu0 %473 }
 0x275   :  { %v482_v61 = vadd.f32 %v474_v57, %v1384_v42  ;;  %v497_v62 = vadd.f32 %v474_v57, %v1348_v27 }
 0x277   :  { %v488_v4 = vmul.f32 0.2, %v482_v61  ;;  %v503_v5 = vmul.f32 0.2, %v497_v62  ;;  %vm485_vm13 = vcmp.gt.f32.partialorder %v482_v61, 0.0  ;;  %vm500_vm14 = vcmp.gt.f32.partialorder %v497_v62, 0.0 }
 0x278   :  { %v476_v56 = vpop.permute.xlu1 %475 }
 0x279   :  { %v498_v58 = vadd.f32 %v476_v56, %v1350_v29  ;;  %v483_v59 = vadd.f32 %v476_v56, %v1389_v50  ;;  %v491_v12 = vsel %vm485_vm13, %v482_v61, %v488_v4  ;;  %v506_v13 = vsel %vm500_vm14, %v497_v62, %v503_v5 }
 0x27a   :  { %v513_v21 = vsel %vm512_vm3, %v491_v12, -inf  ;;  %v524_v22 = vsel %vm512_vm3, %v506_v13, -inf }
 0x27b   :  { %v504_v60 = vmul.f32 0.2, %v498_v58  ;;  %vm501_vm11 = vcmp.gt.f32.partialorder %v498_v58, 0.0  ;;  %v489_v2 = vmul.f32 0.2, %v483_v59  ;;  %vm486_vm12 = vcmp.gt.f32.partialorder %v483_v59, 0.0 }
 0x27d   :  { %v507_v3 = vsel %vm501_vm11, %v498_v58, %v504_v60  ;;  %v492_v8 = vsel %vm486_vm12, %v483_v59, %v489_v2 }
 0x27e   :  { %v510_v6 = vadd.f32 %v507_v3, %v468_v1  ;;  %v514_v17 = vsel %vm512_vm3, %v492_v8, -inf }
 0x27f   :  { %v516_v25 = vmax.f32 %v513_v21, %v514_v17  ;;  %v777_v21 = vld [vmem:[%s1515_s4 + $0x10] sm:$0xff] }
 0x280   :  { %v525_v18 = vsel %vm512_vm3, %v510_v6, -inf }
 0x281   :  { %v527_v26 = vmax.f32 %v524_v22, %v525_v18 }
 0x282   :  { %v478_v7 = vpop.permute.xlu1 %477 }
 0x283   :  { %v484_v9 = vadd.f32 %v478_v7, %v1391_v52  ;;  %v499_v10 = vadd.f32 %v478_v7, %v1352_v31 }
 0x285   :  { %vm487_vm4 = vcmp.gt.f32.partialorder %v484_v9, 0.0  ;;  %v490_v15 = vmul.f32 0.2, %v484_v9  ;;  %vm502_vm6 = vcmp.gt.f32.partialorder %v499_v10, 0.0  ;;  %v505_v16 = vmul.f32 0.2, %v499_v10 }
 0x287   :  { %v493_v19 = vsel %vm487_vm4, %v484_v9, %v490_v15  ;;  %v508_v20 = vsel %vm502_vm6, %v499_v10, %v505_v16 }
 0x288   :  { %v496_v23 = vadd.f32 %v493_v19, %v463_v14  ;;  %v511_v24 = vadd.f32 -1e+30, %v508_v20 }
 0x28a   :  { %v515_v28 = vsel %vm512_vm3, %v496_v23, -inf  ;;  %v526_v30 = vsel %vm512_vm3, %v511_v24, -inf }
 0x28b   :  { %v517_v32 = vmax.f32 %v516_v25, %v515_v28  ;;  %v528_v34 = vmax.f32 %v527_v26, %v526_v30  ;;  %v776_v26 = vld [vmem:[%s1515_s4 + $0x8] sm:$0xff]  ;;  %v775_v28 = vld [vmem:[%s1515_s4] sm:$0xff] }
 0x28d   :  { %v518_v36 = vrot.slane %v517_v32, 4  ;;  %v529_v38 = vrot.slane %v528_v34, 4 }
 0x28f   :  { %v519_v39 = vmax.f32 %v517_v32, %v518_v36  ;;  %v530_v40 = vmax.f32 %v528_v34, %v529_v38 }
 0x291   :  { %v520_v41 = vrot.slane %v519_v39, 2  ;;  %v531_v43 = vrot.slane %v530_v40, 2 }
 0x293   :  { %v521_v44 = vmax.f32 %v519_v39, %v520_v41  ;;  %v532_v45 = vmax.f32 %v530_v40, %v531_v43 }
 0x295   :  { %v522_v46 = vrot.slane %v521_v44, 1  ;;  %v533_v47 = vrot.slane %v532_v45, 1 }
 0x297   :  { %v523_v48 = vmax.f32 %v521_v44, %v522_v46  ;;  %v534_v49 = vmax.f32 %v532_v45, %v533_v47 }
 0x299   :  { %v535_v51 = vmax.f32 %v523_v48, %v534_v49 }
 0x29b   :  { %v538_v53 = vsub.f32 %v496_v23, %v535_v51  ;;  %v547_v55 = vsub.f32 %v511_v24, %v535_v51  ;;  %v537_v56 = vsub.f32 %v492_v8, %v535_v51  ;;  %v546_v57 = vsub.f32 %v510_v6, %v535_v51 }
 0x29c   :  { %v536_v58 = vsub.f32 %v491_v12, %v535_v51  ;;  %v545_v59 = vsub.f32 %v506_v13, %v535_v51  ;;  %v1008_v12 = vld [vmem:[%s1520_s9] ss:$0 sm:$0xff] }
 0x29d   :  { %v543_v60 = vmul.f32 1.442695, %v538_v53  ;;  %v552_v61 = vmul.f32 1.442695, %v547_v55  ;;  %v541_v62 = vmul.f32 1.442695, %v537_v56  ;;  %vm270_vm7 = vcmp.eq.s32.totalorder %v1394_v54, %v1008_v12 }
 0x29e   :  { %v550_v63 = vmul.f32 1.442695, %v546_v57  ;;  %v539_v0 = vmul.f32 1.442695, %v536_v58  ;;  %v548_v1 = vmul.f32 1.442695, %v545_v59 }
 0x29f   :  { %1170 = vpow2.f32 %v543_v60  ;;  %v1431_v15 = vsel %vm270_vm7, 1.0, %v1209_v11 }
 0x2a0   :  { %1172 = vpow2.f32 %v552_v61 }
 0x2a1   :  { %1174 = vpow2.f32 %v541_v62 }
 0x2a2   :  { %1176 = vpow2.f32 %v550_v63 }
 0x2a3   :  { %1178 = vpow2.f32 %v539_v0 }
 0x2a4   :  { %1180 = vpow2.f32 %v548_v1 }
 0x2ac   :  { %v1410_v2 = vpop.eup %1170 }
 0x2ad   :  { %v1412_v3 = vpop.eup %1172 }
 0x2ae   :  { %v1414_v4 = vpop.eup %1174  ;;  %v556_v5 = vadd.f32 %v1412_v3, %v1410_v2 }
 0x2af   :  { %v1418_v6 = vpop.eup %1176 }
 0x2b0   :  { %v1179_v7 = vpop.eup %1178  ;;  %564 = vrot.lane.b32.xlu0 %v556_v5, %s1214_s8  ;;  %v555_v8 = vadd.f32 %v1418_v6, %v1414_v4 }
 0x2b1   :  { %v1181_v9 = vpop.eup %1180 }
 0x2b2   :  { %562 = vrot.lane.b32.xlu1 %v555_v8, %s1214_s8  ;;  %v554_v10 = vadd.f32 %v1181_v9, %v1179_v7 }
 0x2b4   :  { %560 = vrot.lane.b32.xlu0 %v554_v10, %s1214_s8 }
 0x322   :  { %v565_v13 = vpop.permute.xlu0 %564 }
 0x323   :  { %1115 = vmatpush3.msra.mxu0 %v565_v13 }
 0x324   :  { %v563_v14 = vpop.permute.xlu1 %562  ;;  %1116 = vmatprep.subr.mxu0 %v1209_v11 }
 0x325   :  { %1117 = vmatpush3.msra.mxu0 %v563_v14 }
 0x326   :  { %1118 = vmatprep.subr.mxu0 %v1209_v11  ;;  %v561_v16 = vpop.permute.xlu0 %560 }
 0x327   :  { %1119 = vmatpush3.msra.mxu0 %v561_v16 }
 0x328   :  { %1121 = vmatmul.mubr.msk.f32.vlgmr.msra.gmra.mxu0 %vm569_vm8, %v1431_v15  ;;  %1123 = vmatprep.subr.mxu0 %v1209_v11 }
 0x329   :  { %1125 = vmatprep.mubr.msk.f32.mxu0 %vm1210_vm1, %v1209_v11 }
 0x3e8   :  { %v639_v17 = vpop.f32.mrf.mxu0 }
 0x3e9   :  { %v640_v18 = vadd.f32 1e-06, %v639_v17 }
 0x3ea   :  { %v1122_v19 = vpop.f32.mrf.mxu0 }
 0x3eb   :  { %1182 = vrcp.f32 %v640_v18 }
 0x3f8   :  { %v1183_v20 = vpop.eup %1182 }
 0x3f9   :  { %1124 = vmatpush3.msra.mxu0 %v1183_v20 }
 0x3fa   :  { %1126 = vmatmul.mubr.msk.f32.vlgmr.msra.gmra.mxu0 %vm366_vm5, %v1355_v33  ;;  %1151 = vmatprep.subr.mxu0 %v1209_v11  ;;  %v778_v33 = vld [vmem:[%s1515_s4 + $0x18] sm:$0xff] }
 0x3fb   :  { %1128 = vmatprep.mubr.msk.f32.mxu0 %vm1210_vm1, %v1209_v11  ;;  %1135 = vmatpush3.msra.mxu1 %v778_v33 }
 0x3fc   :  { %1136 = vmatprep.subr.mxu1 %v1209_v11 }
 0x3fd   :  { %1137 = vmatpush3.msra.mxu1 %v777_v21  ;;  %v1025_v21 = vld [vmem:[%s1516_s5] ss:$0 sm:$0xff] }
 0x3fe   :  { %1129 = vmatmul.mubr.msk.f32.gmra.mxu0 %vm366_vm5, %v1361_v35  ;;  %1138 = vmatprep.subr.mxu1 %v1209_v11 }
 0x3ff   :  { %1131 = vmatprep.mubr.msk.f32.mxu0 %vm1210_vm1, %v1209_v11  ;;  %1139 = vmatpush3.msra.mxu1 %v776_v26 }
 0x400   :  { %1140 = vmatprep.subr.mxu1 %v1209_v11 }
 0x401   :  { %1141 = vmatpush3.msra.mxu1 %v775_v28 }
 0x402   :  { %1132 = vmatmul.mubr.msk.f32.gmra.mxu0 %vm366_vm5, %v1370_v37 }
 0x403   :  { %1157 = vmatprep.mubr.msk.f32.mxu0 %vm1210_vm1, %v1209_v11 }
 0x4ba   :  { %v710_v22 = vpop.f32.mrf.mxu0 }
 0x4bb   :  { %727 = vrot.lane.b32.xlu1 %v710_v22, %s1212_s7 }
 0x4bc   :  { %v1127_v35 = vpop.f32.mrf.mxu0 }
 0x4bd   :  { %v1026_v35 = vld [vmem:[%s1517_s6] ss:$0 sm:$0xff] }
 0x4be   :  { %v715_v37 = vpop.f32.mrf.mxu0 }
 0x4bf   :  { %729 = vrot.lane.b32.xlu0 %v715_v37, %s1212_s7 }
 0x4c0   :  { %v1130_v23 = vpop.f32.mrf.mxu0 }
 0x4c2   :  { %v720_v24 = vpop.f32.mrf.mxu0 }
 0x4c3   :  { %731 = vrot.lane.b32.xlu1 %v720_v24, %s1212_s7 }
 0x4c4   :  { %v1133_v25 = vpop.f32.mrf.mxu0 }
 0x52d   :  { %v728_v30 = vpop.permute.xlu1 %727 }
 0x52e   :  { %v736_v32 = vmul.f32 %v1179_v7, %v728_v30  ;;  %v754_v34 = vmul.f32 %v1181_v9, %v728_v30 }
 0x530   :  { %742 = vrot.lane.b32.xlu0 %v736_v32, %s1214_s8  ;;  %760 = vrot.lane.b32.xlu1 %v754_v34, %s1214_s8 }
 0x531   :  { %v730_v36 = vpop.permute.xlu0 %729 }
 0x532   :  { %v737_v38 = vmul.f32 %v1414_v4, %v730_v36  ;;  %v755_v39 = vmul.f32 %v1418_v6, %v730_v36 }
 0x534   :  { %744 = vrot.lane.b32.xlu0 %v737_v38, %s1214_s8  ;;  %762 = vrot.lane.b32.xlu1 %v755_v39, %s1214_s8 }
 0x535   :  { %v732_v40 = vpop.permute.xlu1 %731 }
 0x536   :  { %v738_v41 = vmul.f32 %v1410_v2, %v732_v40  ;;  %v756_v43 = vmul.f32 %v1412_v3, %v732_v40 }
 0x538   :  { %764 = vrot.lane.b32.xlu1 %v756_v43, %s1214_s8  ;;  %746 = vrot.lane.b32.xlu0 %v738_v41, %s1214_s8 }
 0x5a2   :  { %v743_v44 = vpop.permute.xlu0 %742  ;;  %v761_v45 = vpop.permute.xlu1 %760 }
 0x5a3   :  { %v751_v46 = vmul.f32 %v743_v44, %v1384_v42  ;;  %v769_v47 = vmul.f32 %v761_v45, %v1348_v27 }
 0x5a5   :  { %v772_v48 = vadd.f32 %v769_v47, %v751_v46 }
 0x5a6   :  { %v745_v49 = vpop.permute.xlu0 %744  ;;  %v763_v51 = vpop.permute.xlu1 %762 }
 0x5a7   :  { %v752_v53 = vmul.f32 %v745_v49, %v1389_v50  ;;  %v770_v55 = vmul.f32 %v763_v51, %v1350_v29  ;;  %1143 = vmatmul.mubr.msk.f32.vlgmr.msra.gmra.mxu1 %vm42_vm0, %v772_v48 }
 0x5a8   :  { %1145 = vmatprep.mubr.msk.f32.mxu1 %vm1210_vm1, %v1209_v11 }
 0x5a9   :  { %v773_v56 = vadd.f32 %v770_v55, %v752_v53 }
 0x5aa   :  { %v747_v57 = vpop.permute.xlu0 %746  ;;  %v765_v58 = vpop.permute.xlu1 %764 }
 0x5ab   :  { %v753_v59 = vmul.f32 %v747_v57, %v1391_v52  ;;  %v771_v42 = vmul.f32 %v765_v58, %v1352_v31  ;;  %1146 = vmatmul.mubr.msk.f32.gmra.mxu1 %vm42_vm0, %v773_v56 }
 0x5ac   :  { %1148 = vmatprep.mubr.msk.f32.mxu1 %vm1210_vm1, %v1209_v11  ;;  %vm938_vm1 = vcmp.lt.s32.totalorder %v1394_v54, 7 }
 0x5ad   :  { %v774_v27 = vadd.f32 %v771_v42, %v753_v59  ;;  %v1024_v31 = vsel %vm938_vm1, 1.0, %v1209_v11 }
 0x5af   :  { %1149 = vmatmul.mubr.msk.f32.gmra.mxu1 %vm42_vm0, %v774_v27 }
 0x667   :  { %v854_v29 = vpop.f32.mrf.mxu1 }
 0x669   :  { %v1144_v50 = vpop.f32.mrf.mxu1 }
 0x66b   :  { %v859_v60 = vpop.f32.mrf.mxu1 }
 0x66d   :  { %v1147_v61 = vpop.f32.mrf.mxu1 }
 0x66f   :  { %v864_v62 = vpop.f32.mrf.mxu1 }
 0x670   :  { %1152 = vmatpush3.msra.mxu0 %v864_v62 }
 0x671   :  { %v1150_v63 = vpop.f32.mrf.mxu1  ;;  %1153 = vmatprep.subr.mxu0 %v1209_v11 }
 0x672   :  { %1154 = vmatpush3.msra.mxu0 %v859_v60 }
 0x673   :  { %1155 = vmatprep.subr.mxu0 %v1209_v11 }
 0x674   :  { %1156 = vmatpush3.msra.mxu0 %v854_v29 }
 0x675   :  { %1158 = vmatmul.mubr.msk.f32.vlgmr.msra.gmra.mxu0 %vm569_vm8, %v1431_v15 }
 0x735   :  { %v934_v52 = vpop.f32.mrf.mxu0 }
 0x736   :  { %v941_v0 = vmul.f32 %v1024_v31, %v934_v52 }
 0x737   :  { %v1159_v1 = vpop.f32.mrf.mxu0 }
 0x738   :  { %v942_v2 = vsel %vm129_vm2, %v941_v0, 0.0 }
 0x739   :  { %v943_v3 = vrot.slane %v942_v2, 4 }
 0x73b   :  { %v944_v4 = vadd.f32 %v943_v3, %v942_v2 }
 0x73d   :  { %v945_v5 = vrot.slane %v944_v4, 2 }
 0x73f   :  { %v946_v6 = vadd.f32 %v945_v5, %v944_v4 }
 0x741   :  { %v947_v7 = vrot.slane %v946_v6, 1 }
 0x743   :  { %v948_v8 = vadd.f32 %v947_v7, %v946_v6 }
 0x745   :  { %v950_v9 = vmul.f32 0.14285715, %v948_v8 }
 0x747   :  { %v951_v10 = vsub.f32 %v934_v52, %v950_v9 }
 0x749   :  { %v952_v12 = vmul.f32 %v1024_v31, %v951_v10 }
 0x74b   :  { %v953_v13 = vmul.f32 %v952_v12, %v952_v12 }
 0x74d   :  { %v954_v14 = vsel %vm129_vm2, %v953_v13, 0.0 }
 0x74e   :  { %v955_v54 = vrot.slane %v954_v14, 4 }
 0x750   :  { %v956_v15 = vadd.f32 %v955_v54, %v954_v14 }
 0x752   :  { %v957_v11 = vrot.slane %v956_v15, 2 }
 0x754   :  { %v958_v16 = vadd.f32 %v957_v11, %v956_v15 }
 0x756   :  { %v959_v17 = vrot.slane %v958_v16, 1 }
 0x758   :  { %v960_v18 = vadd.f32 %v959_v17, %v958_v16 }
 0x75a   :  { %v961_v19 = vmul.f32 0.14285715, %v960_v18 }
 0x75c   :  { %v962_v20 = vadd.f32 1e-05, %v961_v19 }
 0x75e   :  { %1184 = vrsqrt.f32 %v962_v20 }
 0x76b   :  { %v1185_v33 = vpop.eup %1184 }
 0x76c   :  { %v964_v22 = vmul.f32 %v1185_v33, %v952_v12 }
 0x76e   :  { %v972_v37 = vmul.f32 %v1025_v21, %v964_v22 }
 0x770   :  { %v980_v23 = vadd.f32 %v1026_v35, %v972_v37 }
 0x772   :  { %v981_v24 = vmax.f32 %v980_v23, 0.0 }
 0x774   :  { %982 = vst.msk [vmem:[#allocation2] sm:$0xff] %vm129_vm2, %v981_v24 }
 0x775   :  { %1197 = shalt.err (!%p1194_p4)
}
 0x776   :  { %992 = dma.vmem_to_hbm [thread:$0]  %s990_s15, 128, %s1521_s10, [#allocation3]  }
 0x777   :  { %1206 = dma.done.wait [#allocation3], 128  }
 0x778   :  { %1207 = vsyncadd [#allocation3], 4294967168 }
 0x779   :  { %996 = vsyncpa [#allocation3], 1 }

</bundles_post_ra>
